<compile_context>
chip_gen: v7x
topology: tpu7x:2x2x1
jax: 0.10.0
libtpu: 0.0.40
codegen_flags: <defaults>
</compile_context>

<pallas_src>
import jax
import jax.numpy as jnp
from jax.experimental import pallas as pl
from jax.experimental.pallas import tpu as pltpu


def _round_up(x, m):
    return (x + m - 1) // m * m


def _cdiv(a, b):
    return -(-a // b)


# --------------------------------------------------------------------------
# Kernel: one (T, tile) slab of phi -> accumulate per-lane loss sums.
# --------------------------------------------------------------------------
def _weighted_nll_kernel(phi_ref, idx_ref, w_at_ref, w_off_ref, wy_ref, acc_ref):
    @pl.when(pl.program_id(1) == 0)
    def _init():
        acc_ref[...] = jnp.zeros_like(acc_ref)

    phi = phi_ref[...].astype(jnp.float32)   # (T, Nt)  cast-on-load (bf16 ok)
    idx = idx_ref[...]                       # (1, Nt)  int32; -1 marks padded lanes
    w_at = w_at_ref[...]                     # (1, Nt)  weight at bin == idx
    w_off = w_off_ref[...]                   # (1, Nt)  weight at bins < idx
    wy = wy_ref[...]                         # (1, Nt)  events * w_at

    row = jax.lax.broadcasted_iota(jnp.int32, phi.shape, 0)   # bin index (sublanes)
    is_t = row == idx                                          # scatter position
    keep = row <= idx          # bins kept by cumsum(1).gather(1, idx); empty on pad lanes

    # binary_cross_entropy_with_logits core term (numerically stable, y == 0 part):
    #   max(phi, 0) + log1p(exp(-|phi|))
    sp = jnp.maximum(phi, 0.0) + jnp.log1p(jnp.exp(-jnp.abs(phi)))
    # TODO(synk): on v7x compute `sp` in bf16 on the EUP to keep HBM the binding unit.

    # Per-element weight with the keep mask folded in; the -phi*y term only
    # exists at bin == idx with coefficient wy = events * w_at.
    w = jnp.where(is_t, w_at, jnp.where(keep, w_off, 0.0))
    loss = w * sp - jnp.where(is_t, wy, 0.0) * phi

    # Reduce the bin (sublane) axis on the XLU; the lane axis stays dense and is
    # reduced in the wrapper (all kernel stores stay full-lane / unmasked).
    acc_ref[...] += jnp.sum(loss, axis=0, keepdims=True)[None]   # (1, 1, Nt)


# --------------------------------------------------------------------------
# Tiny pre-pass (depends only on (N,) idx/events) == module.get_weights
# --------------------------------------------------------------------------
def _bin_weights(idx, ev, num_bins, alpha):
    t = jnp.arange(num_bins, dtype=jnp.int32)
    at_t = idx[:, None] == t[None, :]                                   # (N, T)
    pos_counts = jnp.sum(at_t & (ev[:, None] == 1.0), axis=0).astype(jnp.float32)
    neg_counts = (jnp.sum(at_t & (ev[:, None] == 0.0), axis=0)
                  + jnp.sum(idx[:, None] > t[None, :], axis=0)).astype(jnp.float32)
    w_pos = jnp.clip((neg_counts / (pos_counts + 1e-6)) ** alpha, 0.1, 10.0)
    w_neg = jnp.clip((pos_counts / (neg_counts + 1e-6)) ** alpha, 0.1, 10.0)
    return w_pos, w_neg


# --------------------------------------------------------------------------
# Wrapper
# --------------------------------------------------------------------------
def weighted_nll_logistic_hazard_loss(phi, idx_durations, events, *, num_bins=None,
                                      alpha=0.5, reduction="mean",
                                      lane_tile=32768, n_core_splits=1,
                                      phi_is_transposed=False):
    """WeightedNLLLogistiHazardLoss.forward.

    phi: (N, T) float (or (T, N) if phi_is_transposed=True); idx_durations: (N,) int
    with values < T (and < num_bins); events: (N,) in {0, 1}.  Returns scalar loss.

    n_core_splits=2 enables a CORE_PARALLEL split of the lane tiles across the two
    TensorCores of a v7x chip; leave at 1 on v5e/v6e.
    """
    if phi_is_transposed:
        T, N = phi.shape
    else:
        N, T = phi.shape
    num_bins = T if num_bins is None else num_bins

    idx = idx_durations.reshape(-1).astype(jnp.int32)
    ev = events.reshape(-1).astype(jnp.float32)

    # ---- hoisted weight computation + per-sample pre-combine (tiny, plain JAX) ----
    w_pos, w_neg = _bin_weights(idx, ev, num_bins, alpha)
    wp_row = w_pos[idx]
    wn_row = w_neg[idx]
    # Weight at the scattered position (y == ev there): wp if ev==1, wn if ev==0,
    # 1.0 otherwise (mirrors torch.ones_like default for non-binary events).
    w_at = jnp.where(ev == 1.0, wp_row, jnp.where(ev == 0.0, wn_row, 1.0))
    w_off = wn_row                    # bins strictly below idx have y == 0
    wy = ev * w_at                    # coefficient of the -phi*y term at bin == idx
    # TODO(synk): pack (w_at, w_off) as a bf16 pair in one u32 row (pltpu.bitcast)
    # to cut side-row HBM traffic; kept f32 here to preserve exact f32 numerics.

    # ---- adaptive lane tiling (minimal over-padding, optional 2-core split) ----
    lane_tile = max(128, _round_up(int(lane_tile), 128))
    n_pad128 = _round_up(max(N, 1), 128)
    num_tiles = max(1, _cdiv(n_pad128, lane_tile))
    n_par = max(1, int(n_core_splits))
    if num_tiles < n_par:
        n_par = 1
    tiles_per_par = _cdiv(num_tiles, n_par)
    total_tiles = n_par * tiles_per_par
    tile = _round_up(_cdiv(n_pad128, total_tiles), 128)   # equalized tiles, <= lane_tile
    n_pad = tile * total_tiles
    pad = n_pad - N

    # Lane-dense (T, N_pad) phi.  Single fused transpose+pad copy at most; callers
    # that already hold phi as (T, N) skip the transpose entirely.
    phi_t = phi if phi_is_transposed else phi.T
    if pad:
        phi_t = jnp.pad(phi_t, ((0, 0), (0, pad)))

    idx2 = jnp.pad(idx, (0, pad), constant_values=-1).reshape(1, n_pad)   # -1 => contributes 0
    w_at2 = jnp.pad(w_at, (0, pad)).reshape(1, n_pad)
    w_off2 = jnp.pad(w_off, (0, pad)).reshape(1, n_pad)
    wy2 = jnp.pad(wy, (0, pad)).reshape(1, n_pad)

    lane_map = lambda c, i: (0, c * tiles_per_par + i)
    partials = pl.pallas_call(
        _weighted_nll_kernel,
        out_shape=jax.ShapeDtypeStruct((n_par, 1, tile), jnp.float32),
        grid_spec=pltpu.PrefetchScalarGridSpec(
            num_scalar_prefetch=0,
            grid=(n_par, tiles_per_par),
            in_specs=[
                # NOTE: on v5e, add pipeline_mode=pl.Buffered(3) to the phi spec if
                # profiling shows exposed DMA on the phi stream.
                pl.BlockSpec((T, tile), lane_map),
                pl.BlockSpec((1, tile), lane_map),
                pl.BlockSpec((1, tile), lane_map),
                pl.BlockSpec((1, tile), lane_map),
                pl.BlockSpec((1, tile), lane_map),
            ],
            out_specs=pl.BlockSpec((1, 1, tile), lambda c, i: (c, 0, 0)),
        ),
        compiler_params=pltpu.CompilerParams(
            dimension_semantics=(
                pltpu.CORE_PARALLEL if n_par > 1 else pltpu.ARBITRARY,
                pltpu.ARBITRARY,
            ),
            vmem_limit_bytes=64 * 1024 * 1024,
        ),
    )(phi_t, idx2, w_at2, w_off2, wy2)

    total = jnp.sum(partials)          # tiny (n_par * tile) reduce in the wrapper
    if reduction == "sum":
        return total
    if reduction == "mean":
        return total / jnp.float32(N)
    # TODO(synk): reduction='none' (per-sample loss vector output) not implemented.
    raise ValueError(f"`reduction` = {reduction} is not valid here. Use 'mean' or 'sum'.")


# ---------------- pure-JAX reference (mirrors the PyTorch module) ----------------
def _reference(phi, idx_durations, events, num_bins=8, alpha=0.5):
    phi = phi.astype(jnp.float32)
    idx = idx_durations.astype(jnp.int32)
    ev = events.astype(jnp.float32)
    N, T = phi.shape

    pos_counts = jnp.zeros((num_bins,), jnp.float32)
    neg_counts = jnp.zeros((num_bins,), jnp.float32)
    for t in range(num_bins):
        mask_t = idx == t
        pos_counts = pos_counts.at[t].add(jnp.sum(jnp.where(mask_t, ev == 1.0, False)))
        neg_counts = neg_counts.at[t].add(
            jnp.sum(jnp.where(mask_t, ev == 0.0, False)) + jnp.sum(idx > t))
    wp = jnp.clip((neg_counts / (pos_counts + 1e-6)) ** alpha, 0.1, 10.0)
    wn = jnp.clip((pos_counts / (neg_counts + 1e-6)) ** alpha, 0.1, 10.0)

    y = jnp.zeros_like(phi).at[jnp.arange(N), idx].set(ev)
    wp_row = wp[idx][:, None]
    wn_row = wn[idx][:, None]
    w = jnp.where(y == 1.0, wp_row, jnp.where(y == 0.0, wn_row, 1.0))
    bce = w * (jnp.maximum(phi, 0.0) - phi * y + jnp.log1p(jnp.exp(-jnp.abs(phi))))
    loss = jnp.cumsum(bce, axis=1)[jnp.arange(N), idx]
    return jnp.mean(loss)


if __name__ == "__main__":
    num_bins = 8
    key = jax.random.PRNGKey(0)

    # ---- 1) base case: small batch, f32, single tile ----
    N = 16
    k1, k2, k3, k4 = jax.random.split(key, 4)
    phi = jax.random.normal(k1, (N, num_bins), dtype=jnp.float32)
    idx_durations = jax.random.randint(k2, (N,), 0, num_bins, dtype=jnp.int32)
    events = jax.random.bernoulli(k3, 0.6, (N,)).astype(jnp.float32)

    out = jax.block_until_ready(
        weighted_nll_logistic_hazard_loss(phi, idx_durations, events, alpha=0.5))
    ref = _reference(phi, idx_durations, events, num_bins=num_bins, alpha=0.5)
    assert jnp.allclose(out, ref, rtol=1e-5, atol=1e-5), (out, ref)

    # ---- 2) pre-transposed (T, N) fast path gives the same answer ----
    out_t = jax.block_until_ready(
        weighted_nll_logistic_hazard_loss(phi.T, idx_durations, events,
                                          alpha=0.5, phi_is_transposed=True))
    assert jnp.allclose(out_t, ref, rtol=1e-5, atol=1e-5), (out_t, ref)

    # ---- 3) ragged batch (not a multiple of 128) + multi-tile accumulation ----
    N2 = 300
    k5, k6, k7 = jax.random.split(k4, 3)
    phi2 = jax.random.normal(k5, (N2, num_bins), dtype=jnp.float32)
    idx2 = jax.random.randint(k6, (N2,), 0, num_bins, dtype=jnp.int32)
    ev2 = jax.random.bernoulli(k7, 0.4, (N2,)).astype(jnp.float32)
    out2 = jax.block_until_ready(
        weighted_nll_logistic_hazard_loss(phi2, idx2, ev2, alpha=0.5, lane_tile=256))
    ref2 = _reference(phi2, idx2, ev2, num_bins=num_bins, alpha=0.5)
    assert jnp.allclose(out2, ref2, rtol=1e-5, atol=1e-5), (out2, ref2)

    # ---- 4) bf16 phi preserved through the DMA, cast on load ----
    phi2_bf = phi2.astype(jnp.bfloat16)
    out3 = jax.block_until_ready(
        weighted_nll_logistic_hazard_loss(phi2_bf, idx2, ev2, alpha=0.5))
    ref3 = _reference(phi2_bf, idx2, ev2, num_bins=num_bins, alpha=0.5)
    assert jnp.allclose(out3, ref3, rtol=1e-4, atol=1e-4), (out3, ref3)

    print("KERNEL_OK")
</pallas_src>

<mosaic_0001>
module attributes {stable_mosaic.version = 11 : i64} {
  func.func @_weighted_nll_kernel(%arg0: i32, %arg1: i32, %arg2: memref<8x128xf32, #tpu.memory_space<vmem>>, %arg3: memref<1x128xi32, #tpu.memory_space<vmem>>, %arg4: memref<1x128xf32, #tpu.memory_space<vmem>>, %arg5: memref<1x128xf32, #tpu.memory_space<vmem>>, %arg6: memref<1x128xf32, #tpu.memory_space<vmem>>, %arg7: memref<1x1x128xf32, #tpu.memory_space<vmem>>) attributes {dimension_semantics = [#tpu.dimension_semantics<arbitrary>, #tpu.dimension_semantics<arbitrary>], iteration_bounds = array<i64: 1, 1>, scalar_prefetch = 0 : i64, scratch_operands = 0 : i64, tpu.core_type = #tpu.core_type<tc>, window_params = [{transform_indices = @transform_0, window_bounds = array<i64: 8, 128>}, {transform_indices = @transform_1, window_bounds = array<i64: 1, 128>}, {transform_indices = @transform_2, window_bounds = array<i64: 1, 128>}, {transform_indices = @transform_3, window_bounds = array<i64: 1, 128>}, {transform_indices = @transform_4, window_bounds = array<i64: 1, 128>}, {transform_indices = @transform_5, window_bounds = array<i64: 1, 1, 128>}]} {
    %c0_i32 = arith.constant 0 : i32
    %0 = arith.cmpi eq, %arg1, %c0_i32 : i32
    %1 = arith.extui %0 : i1 to i32
    %c0_i32_0 = arith.constant 0 : i32
    %2 = arith.cmpi ne, %1, %c0_i32_0 : i32
    scf.if %2 {
      %cst_20 = arith.constant 0.000000e+00 : f32
      %41 = vector.broadcast %cst_20 : f32 to vector<1x1x128xf32>
      %c0_21 = arith.constant 0 : index
      %c0_22 = arith.constant 0 : index
      %c0_23 = arith.constant 0 : index
      %42 = vector.load %arg7[%c0_21, %c0_22, %c0_23] : memref<1x1x128xf32, #tpu.memory_space<vmem>>, vector<1x1x128xf32>
      tpu.vector_store %arg7[%c0_21, %c0_22, %c0_23], %41 {strides = array<i32>} : memref<1x1x128xf32, #tpu.memory_space<vmem>>, vector<1x1x128xf32>,
    } else {
    }
    %c0 = arith.constant 0 : index
    %c0_1 = arith.constant 0 : index
    %3 = vector.load %arg2[%c0, %c0_1] : memref<8x128xf32, #tpu.memory_space<vmem>>, vector<8x128xf32>
    %c0_2 = arith.constant 0 : index
    %c0_3 = arith.constant 0 : index
    %4 = vector.load %arg3[%c0_2, %c0_3] : memref<1x128xi32, #tpu.memory_space<vmem>>, vector<1x128xi32>
    %c0_4 = arith.constant 0 : index
    %c0_5 = arith.constant 0 : index
    %5 = vector.load %arg4[%c0_4, %c0_5] : memref<1x128xf32, #tpu.memory_space<vmem>>, vector<1x128xf32>
    %c0_6 = arith.constant 0 : index
    %c0_7 = arith.constant 0 : index
    %6 = vector.load %arg5[%c0_6, %c0_7] : memref<1x128xf32, #tpu.memory_space<vmem>>, vector<1x128xf32>
    %c0_8 = arith.constant 0 : index
    %c0_9 = arith.constant 0 : index
    %7 = vector.load %arg6[%c0_8, %c0_9] : memref<1x128xf32, #tpu.memory_space<vmem>>, vector<1x128xf32>
    %8 = tpu.iota {dimensions = array<i32: 0>} : vector<8x128xi32>
    %9 = vector.broadcast %4 : vector<1x128xi32> to vector<8x128xi32>
    %10 = arith.cmpi eq, %8, %9 : vector<8x128xi32>
    %11 = vector.broadcast %4 : vector<1x128xi32> to vector<8x128xi32>
    %12 = arith.cmpi sle, %8, %11 : vector<8x128xi32>
    %cst = arith.constant 0.000000e+00 : f32
    %13 = vector.broadcast %cst : f32 to vector<8x128xf32>
    %14 = arith.maximumf %3, %13 : vector<8x128xf32>
    %15 = math.absf %3 : vector<8x128xf32>
    %cst_10 = arith.constant 0.000000e+00 : f32
    %16 = vector.broadcast %cst_10 : f32 to vector<8x128xf32>
    %17 = arith.subf %16, %15 : vector<8x128xf32>
    %18 = math.exp %17 : vector<8x128xf32>
    %19 = math.log1p %18 : vector<8x128xf32>
    %20 = arith.addf %14, %19 : vector<8x128xf32>
    %cst_11 = arith.constant 0.000000e+00 : f32
    %21 = vector.shape_cast %6 : vector<1x128xf32> to vector<1x128xf32>
    %22 = vector.broadcast %21 : vector<1x128xf32> to vector<8x128xf32>
    %23 = vector.broadcast %cst_11 : f32 to vector<8x128xf32>
    %24 = arith.select %12, %22, %23 : vector<8x128xi1>, vector<8x128xf32>
    %25 = vector.shape_cast %5 : vector<1x128xf32> to vector<1x128xf32>
    %26 = vector.broadcast %25 : vector<1x128xf32> to vector<8x128xf32>
    %27 = arith.select %10, %26, %24 : vector<8x128xi1>, vector<8x128xf32>
    %28 = arith.mulf %27, %20 : vector<8x128xf32>
    %cst_12 = arith.constant 0.000000e+00 : f32
    %29 = vector.shape_cast %7 : vector<1x128xf32> to vector<1x128xf32>
    %30 = vector.broadcast %29 : vector<1x128xf32> to vector<8x128xf32>
    %31 = vector.broadcast %cst_12 : f32 to vector<8x128xf32>
    %32 = arith.select %10, %30, %31 : vector<8x128xi1>, vector<8x128xf32>
    %33 = arith.mulf %32, %3 : vector<8x128xf32>
    %34 = arith.subf %28, %33 : vector<8x128xf32>
    %c0_13 = arith.constant 0 : index
    %c0_14 = arith.constant 0 : index
    %c0_15 = arith.constant 0 : index
    %35 = vector.load %arg7[%c0_13, %c0_14, %c0_15] : memref<1x1x128xf32, #tpu.memory_space<vmem>>, vector<1x1x128xf32>
    %cst_16 = arith.constant dense<0.000000e+00> : vector<128xf32>
    %36 = vector.multi_reduction <add>, %34, %cst_16 [0] : vector<8x128xf32> to vector<128xf32>
    %37 = vector.shape_cast %36 : vector<128xf32> to vector<1x128xf32>
    %38 = vector.shape_cast %37 : vector<1x128xf32> to vector<1x1x128xf32>
    %39 = arith.addf %35, %38 : vector<1x1x128xf32>
    %c0_17 = arith.constant 0 : index
    %c0_18 = arith.constant 0 : index
    %c0_19 = arith.constant 0 : index
    %40 = vector.load %arg7[%c0_17, %c0_18, %c0_19] : memref<1x1x128xf32, #tpu.memory_space<vmem>>, vector<1x1x128xf32>
    tpu.vector_store %arg7[%c0_17, %c0_18, %c0_19], %39 {strides = array<i32>} : memref<1x1x128xf32, #tpu.memory_space<vmem>>, vector<1x1x128xf32>,
    return
  }
  func.func @transform_0(%arg0: i32, %arg1: i32) -> (i32, i32) {
    %c1_i32 = arith.constant 1 : i32
    %0 = arith.muli %arg0, %c1_i32 : i32
    %1 = arith.addi %0, %arg1 : i32
    %c0_i32 = arith.constant 0 : i32
    %c0_i32_0 = arith.constant 0 : i32
    return %c0_i32, %1 : i32, i32
  }
  func.func @transform_1(%arg0: i32, %arg1: i32) -> (i32, i32) {
    %c1_i32 = arith.constant 1 : i32
    %0 = arith.muli %arg0, %c1_i32 : i32
    %1 = arith.addi %0, %arg1 : i32
    %c0_i32 = arith.constant 0 : i32
    %c0_i32_0 = arith.constant 0 : i32
    return %c0_i32, %1 : i32, i32
  }
  func.func @transform_2(%arg0: i32, %arg1: i32) -> (i32, i32) {
    %c1_i32 = arith.constant 1 : i32
    %0 = arith.muli %arg0, %c1_i32 : i32
    %1 = arith.addi %0, %arg1 : i32
    %c0_i32 = arith.constant 0 : i32
    %c0_i32_0 = arith.constant 0 : i32
    return %c0_i32, %1 : i32, i32
  }
  func.func @transform_3(%arg0: i32, %arg1: i32) -> (i32, i32) {
    %c1_i32 = arith.constant 1 : i32
    %0 = arith.muli %arg0, %c1_i32 : i32
    %1 = arith.addi %0, %arg1 : i32
    %c0_i32 = arith.constant 0 : i32
    %c0_i32_0 = arith.constant 0 : i32
    return %c0_i32, %1 : i32, i32
  }
  func.func @transform_4(%arg0: i32, %arg1: i32) -> (i32, i32) {
    %c1_i32 = arith.constant 1 : i32
    %0 = arith.muli %arg0, %c1_i32 : i32
    %1 = arith.addi %0, %arg1 : i32
    %c0_i32 = arith.constant 0 : i32
    %c0_i32_0 = arith.constant 0 : i32
    return %c0_i32, %1 : i32, i32
  }
  func.func @transform_5(%arg0: i32, %arg1: i32) -> (i32, i32, i32) {
    %c0_i32 = arith.constant 0 : i32
    %c0_i32_0 = arith.constant 0 : i32
    %c0_i32_1 = arith.constant 0 : i32
    return %arg0, %c0_i32, %c0_i32_0 : i32, i32, i32
  }
}

</mosaic_0001>

<bundles_post_ra>
// kernel: tpu_custom_call.1
= control target key start
LH: loop header
LB: loop body
LE: loop exit
PB: predicated region body
PF: predicated region fallthrough
CT: control target
= control target key end

     0   :  { %10 = vsyncpa [#allocation3], 0  ;;  %s446_s0 = inlined_call_operand.hbm [shape: f32[8,128], index: 0, kind: input, shape index: {}]   ;;  %s447_s1 = inlined_call_operand.hbm [shape: s32[1,128], index: 1, kind: input, shape index: {}]   ;;  %s448_s2 = inlined_call_operand.hbm [shape: f32[1,128], index: 2, kind: input, shape index: {}]   ;;  %s449_s3 = inlined_call_operand.hbm [shape: f32[1,128], index: 3, kind: input, shape index: {}]   ;;  %s450_s4 = inlined_call_operand.hbm [shape: f32[1,128], index: 4, kind: input, shape index: {}]   ;;  %s451_s5 = inlined_call_operand.hbm [shape: f32[1,1,128], index: 5, kind: output, shape index: {}]  }
   0x1   :  { %11 = vsyncpa [#allocation6], 0 }
   0x2   :  { %12 = vsyncpa [#allocation9], 0 }
   0x3   :  { %13 = vsyncpa [#allocation4], 0  ;;  %s337_s18 = smov [#allocation5]   ;;  %s338_s20 = smov [#allocation8]  }
   0x4   :  { %s36_s19 = sshll.u32 %s337_s18, 4  ;;  %s62_s21 = sshll.u32 %s338_s20, 4  ;;  %s37_s19 = int_to_ptr.vmem [resolvable:$true] %s36_s19  ;;  %s63_s21 = int_to_ptr.vmem [resolvable:$true] %s62_s21 }
   0x5   :  { %s197_s24 = scalar_lea.hbm %s447_s1, 16 }
   0x6   :  { %p198_p0 = scmp.ne.s32.totalorder %s447_s1, %s197_s24  ;;  %p201_p1 = scmp.lt.u32.totalorder %s197_s24, %s447_s1 }
   0x8   :  { %p203_p2 = pnand %p201_p1, %p198_p0 }
   0xa   :  { %206 = shalt.err (!%p203_p2)
}
   0xb   :  { %s207_s29 = scalar_lea.vmem %s37_s19, 16  ;;  %s211_s30 = scalar_lea.vmem %s37_s19, 32 }
   0xc   :  { %p208_p3 = scmp.ne.s32.totalorder %s37_s19, %s207_s29  ;;  %p212_p4 = scmp.lt.s32.totalorder %s37_s19, %s37_s19 }
   0xd   :  { %p213_p5 = scmp.lt.s32.totalorder %s211_s30, %s207_s29 }
   0xf   :  { %p214_p6 = por %p213_p5, %p212_p4 }
  0x11   :  { %p215_p7 = pnand %p214_p6, %p208_p3 }
  0x13   :  { %218 = shalt.err (!%p215_p7)
}
  0x14   :  { %39 = dma.hbm_to_vmem [thread:$0]  %s447_s1, 16, %s37_s19, [#allocation6]  }
  0x15   :  { %s219_s10 = scalar_lea.hbm %s449_s3, 16 }
  0x16   :  { %p220_p8 = scmp.ne.s32.totalorder %s449_s3, %s219_s10  ;;  %p223_p9 = scmp.lt.u32.totalorder %s219_s10, %s449_s3 }
  0x18   :  { %p225_p10 = pnand %p223_p9, %p220_p8 }
  0x1a   :  { %228 = shalt.err (!%p225_p10)
}
  0x1b   :  { %s229_s15 = scalar_lea.vmem %s63_s21, 16  ;;  %s233_s16 = scalar_lea.vmem %s63_s21, 32 }
  0x1c   :  { %p230_p11 = scmp.ne.s32.totalorder %s63_s21, %s229_s15  ;;  %p234_p12 = scmp.lt.s32.totalorder %s63_s21, %s63_s21 }
  0x1d   :  { %p235_p13 = scmp.lt.s32.totalorder %s233_s16, %s229_s15 }
  0x1f   :  { %p236_p0 = por %p235_p13, %p234_p12 }
  0x21   :  { %p237_p1 = pnand %p236_p0, %p230_p11 }
  0x23   :  { %240 = shalt.err (!%p237_p1)
}
  0x24   :  { %65 = dma.hbm_to_vmem [thread:$0]  %s449_s3, 16, %s63_s21, [#allocation9]  }
  0x25   :  { %s339_s18 = smov [#allocation2]   ;;  %s340_s20 = smov [#allocation7]  }
  0x26   :  { %s23_s19 = sshll.u32 %s339_s18, 4  ;;  %s49_s22 = sshll.u32 %s340_s20, 4  ;;  %s24_s19 = int_to_ptr.vmem [resolvable:$true] %s23_s19  ;;  %s50_s22 = int_to_ptr.vmem [resolvable:$true] %s49_s22 }
  0x27   :  { %s241_s25 = scalar_lea.hbm %s446_s0, 128 }
  0x28   :  { %p242_p2 = scmp.ne.s32.totalorder %s446_s0, %s241_s25  ;;  %p245_p3 = scmp.lt.u32.totalorder %s241_s25, %s446_s0 }
  0x2a   :  { %p247_p4 = pnand %p245_p3, %p242_p2 }
  0x2c   :  { %250 = shalt.err (!%p247_p4)
}
  0x2d   :  { %s251_s3 = scalar_lea.vmem %s24_s19, 128  ;;  %p256_p6 = scmp.lt.s32.totalorder %s24_s19, %s24_s19 }
  0x2e   :  { %p252_p5 = scmp.ne.s32.totalorder %s24_s19, %s251_s3  ;;  %p257_p7 = scmp.lt.s32.totalorder %s251_s3, %s251_s3 }
  0x30   :  { %p258_p8 = por %p257_p7, %p256_p6 }
  0x32   :  { %p259_p9 = pnand %p258_p8, %p252_p5 }
  0x34   :  { %262 = shalt.err (!%p259_p9)
}
  0x35   :  { %26 = dma.hbm_to_vmem [thread:$0]  %s446_s0, 128, %s24_s19, [#allocation3]  }
  0x36   :  { %s263_s8 = scalar_lea.hbm %s448_s2, 16 }
  0x37   :  { %p264_p10 = scmp.ne.s32.totalorder %s448_s2, %s263_s8  ;;  %p267_p11 = scmp.lt.u32.totalorder %s263_s8, %s448_s2 }
  0x39   :  { %p269_p12 = pnand %p267_p11, %p264_p10 }
  0x3b   :  { %272 = shalt.err (!%p269_p12)
}
  0x3c   :  { %s273_s13 = scalar_lea.vmem %s50_s22, 16  ;;  %s277_s14 = scalar_lea.vmem %s50_s22, 32 }
  0x3d   :  { %p274_p13 = scmp.ne.s32.totalorder %s50_s22, %s273_s13  ;;  %p278_p0 = scmp.lt.s32.totalorder %s50_s22, %s50_s22 }
  0x3e   :  { %p279_p1 = scmp.lt.s32.totalorder %s277_s14, %s273_s13 }
  0x40   :  { %p280_p2 = por %p279_p1, %p278_p0 }
  0x42   :  { %p281_p3 = pnand %p280_p2, %p274_p13 }
  0x44   :  { %284 = shalt.err (!%p281_p3)
}
  0x45   :  { %52 = dma.hbm_to_vmem [thread:$0]  %s448_s2, 16, %s50_s22, [#allocation6]  }
  0x46   :  { %s341_s16 = smov [#allocation10]   ;;  %s285_s19 = scalar_lea.hbm %s450_s4, 16 }
  0x47   :  { %s75_s1 = sshll.u32 %s341_s16, 4  ;;  %p286_p4 = scmp.ne.s32.totalorder %s450_s4, %s285_s19  ;;  %s76_s1 = int_to_ptr.vmem [resolvable:$true] %s75_s1 }
  0x48   :  { %p289_p5 = scmp.lt.u32.totalorder %s285_s19, %s450_s4 }
  0x4a   :  { %p291_p6 = pnand %p289_p5, %p286_p4 }
  0x4c   :  { %294 = shalt.err (!%p291_p6)
}
  0x4d   :  { %s295_s26 = scalar_lea.vmem %s76_s1, 16  ;;  %s299_s2 = scalar_lea.vmem %s76_s1, 32 }
  0x4e   :  { %p296_p7 = scmp.ne.s32.totalorder %s76_s1, %s295_s26  ;;  %p300_p8 = scmp.lt.s32.totalorder %s76_s1, %s76_s1 }
  0x4f   :  { %p301_p9 = scmp.lt.s32.totalorder %s299_s2, %s295_s26 }
  0x51   :  { %p302_p10 = por %p301_p9, %p300_p8 }
  0x53   :  { %p303_p11 = pnand %p302_p10, %p296_p7 }
  0x55   :  { %306 = shalt.err (!%p303_p11)
}
  0x56   :  { %78 = dma.hbm_to_vmem [thread:$0]  %s450_s4, 16, %s76_s1, [#allocation9]  }
  0x57   :  { %329 = dma.done.wait [#allocation3], 128  }
  0x58   :  { %330 = vsyncadd [#allocation3], 4294967168 }
  0x59   :  { %331 = dma.done.wait [#allocation6], 32  }
  0x5a   :  { %332 = vsyncadd [#allocation6], 4294967264 }
  0x5b   :  { %333 = dma.done.wait [#allocation9], 32  }
  0x5c   :  { %334 = vsyncadd [#allocation9], 4294967264  ;;  %v342_v0 = vmov 0.0   ;;  %v104_v1 = vld [vmem:[#allocation2] sm:$0xff]  ;;  %v109_v7 = vlaneseq  ;;  %v182_v10 = vld [vmem:[#allocation5] ss:$0 sm:$0xff] }
  0x5d   :  { %103 = vst [vmem:[#allocation11] sm:$0x1] %v342_v0  ;;  %v118_v2 = vand.u32 2147483647, %v104_v1  ;;  %v183_v13 = vld [vmem:[#allocation8] ss:$0 sm:$0xff] }
  0x5e   :  { %v110_v9 = vshrl.u32 %v109_v7, 7  ;;  %v185_v14 = vld [vmem:[#allocation10] ss:$0 sm:$0xff]  ;;  %v184_v17 = vld [vmem:[#allocation7] ss:$0 sm:$0xff]  ;;  %v117_v18 = vmax.f32 %v104_v1, 0.0 }
  0x5f   :  { %v119_v3 = vsub.f32 0.0, %v118_v2  ;;  %s343_s4 = smov [#allocation11]  }
  0x60   :  { %vm116_vm0 = vcmp.le.s32.totalorder %v110_v9, %v182_v10  ;;  %vm115_vm1 = vcmp.eq.s32.totalorder %v110_v9, %v182_v10  ;;  %s171_s28 = sshll.u32 %s343_s4, 4  ;;  %s172_s28 = int_to_ptr.vmem [resolvable:$true] %s171_s28 }
  0x61   :  { %v120_v4 = vmul.f32 1.442695, %v119_v3  ;;  %v138_v19 = vsel %vm116_vm0, %v183_v13, 0.0  ;;  %v153_v21 = vsel %vm115_vm1, %v185_v14, 0.0  ;;  %s307_s29 = scalar_lea.vmem %s172_s28, 16  ;;  %s311_s3 = scalar_lea.vmem %s172_s28, 32 }
  0x62   :  { %v145_v23 = vsel %vm115_vm1, %v184_v17, %v138_v19  ;;  %v154_v25 = vmul.f32 %v153_v21, %v104_v1  ;;  %p308_p12 = scmp.ne.s32.totalorder %s172_s28, %s307_s29  ;;  %p312_p13 = scmp.lt.s32.totalorder %s172_s28, %s172_s28 }
  0x63   :  { %193 = vpow2.f32 %v120_v4  ;;  %p313_p0 = scmp.lt.s32.totalorder %s311_s3, %s307_s29 }
  0x64   :  { %v156_v33 = vld [vmem:[#allocation11] sm:$0x1] }
  0x65   :  { %p314_p1 = por %p313_p0, %p312_p13 }
  0x67   :  { %p315_p2 = pnand %p314_p1, %p308_p12 }
  0x6d   :  { %v194_v5 = vpop.eup %193 }
  0x6e   :  { %v122_v6 = vadd.f32 1.0, %v194_v5  ;;  %v125_v8 = vmul.f32 -0.5, %v194_v5  ;;  %v128_v12 = vand.u32 2147483647, %v194_v5 }
  0x70   :  { %195 = vlog2.f32 %v122_v6  ;;  %v126_v11 = vadd.f32 1.0, %v125_v8  ;;  %vm129_vm2 = vcmp.lt.f32.partialorder %v128_v12, 0.0004427343 }
  0x72   :  { %v127_v15 = vmul.f32 %v194_v5, %v126_v11 }
  0x7a   :  { %v196_v16 = vpop.eup %195 }
  0x7b   :  { %v124_v20 = vmul.f32 0.6931472, %v196_v16 }
  0x7d   :  { %v130_v22 = vsel %vm129_vm2, %v127_v15, %v124_v20 }
  0x7e   :  { %v131_v24 = vadd.f32 %v130_v22, %v117_v18 }
  0x80   :  { %v146_v26 = vmul.f32 %v145_v23, %v131_v24 }
  0x82   :  { %v155_v27 = vsub.f32 %v146_v26, %v154_v25 }
  0x84   :  { %v157_v28 = vrot.slane %v155_v27, 4 }
  0x86   :  { %v158_v29 = vadd.f32 %v157_v28, %v155_v27 }
  0x88   :  { %v159_v30 = vrot.slane %v158_v29, 2 }
  0x8a   :  { %v160_v31 = vadd.f32 %v159_v30, %v158_v29 }
  0x8c   :  { %v161_v32 = vrot.slane %v160_v31, 1 }
  0x8e   :  { %v162_v34 = vadd.f32 %v161_v32, %v160_v31 }
  0x90   :  { %v163_v35 = vadd.f32 %v162_v34, %v156_v33 }
  0x92   :  { %164 = vst [vmem:[#allocation11] sm:$0x1] %v163_v35 }
  0x93   :  { %318 = shalt.err (!%p315_p2)
}
  0x94   :  { %s319_s6 = scalar_lea.hbm %s451_s5, 16 }
  0x95   :  { %p320_p3 = scmp.ne.s32.totalorder %s451_s5, %s319_s6  ;;  %p323_p4 = scmp.lt.u32.totalorder %s319_s6, %s451_s5 }
  0x97   :  { %p325_p5 = pnand %p323_p4, %p320_p3 }
  0x99   :  { %328 = shalt.err (!%p325_p5)
}
  0x9a   :  { %174 = dma.vmem_to_hbm [thread:$0]  %s172_s28, 16, %s451_s5, [#allocation4]  }
  0x9b   :  { %335 = dma.done.wait [#allocation4], 16  }
  0x9c   :  { %336 = vsyncadd [#allocation4], 4294967280 }
  0x9d   :  { %178 = vsyncpa [#allocation3], 1 }
  0x9e   :  { %179 = vsyncpa [#allocation6], 1 }
  0x9f   :  { %180 = vsyncpa [#allocation9], 1 }
  0xa0   :  { %181 = vsyncpa [#allocation4], 1 }

</bundles_post_ra>
